<compile_context>
chip_gen: v5e
topology: v5e:2x2
jax: 0.10.0
libtpu: 0.0.40
codegen_flags: <defaults>
</compile_context>

<pallas_src>
import functools

import jax
import jax.numpy as jnp
from jax.experimental import pallas as pl
from jax.experimental.pallas import tpu as pltpu

NC_PAD = 128  # lane-dense classifier width


def _lstm_head_kernel(x_ref, wih_ref, whh_ref, wlin_ref, blin_ref, out_ref,
                      xg_ref, *, T, B_pad, H):
    """Whole forward in one gridless kernel invocation.

    x_ref:    (T*B_pad, dsz) bf16 time-major embedded inputs
    wih_ref:  (dsz, 4H)      bf16 input->gates weight (transposed, order i,f,g,o)
    whh_ref:  (H, 4H)        bf16 hidden->gates weight (transposed)
    wlin_ref: (H, NC_PAD)    bf16 BN-folded classifier weight, zero-padded cols
    blin_ref: (1, NC_PAD)    f32  BN-folded classifier bias, padded lanes = -1e30
    out_ref:  (B_pad, NC_PAD) f32 log-probabilities (padded)
    xg_ref:   (T, B_pad, 4H) f32  VMEM scratch for the input projection
    """
    # Phase 0: input projection for all timesteps in a single bf16 MXU matmul,
    # f32 accumulation; park it in VMEM scratch so it does not stay live as a
    # traced value across the whole recurrence.
    xg = jnp.dot(x_ref[...], wih_ref[...],
                 preferred_element_type=jnp.float32)          # (T*B_pad, 4H) f32
    xg_ref[...] = xg.reshape(T, B_pad, 4 * H)                 # tile-aligned reshape

    whh = whh_ref[...]                                        # (H, 4H) bf16, hoisted

    # Hoisted lane mask: lanes [2H, 3H) are the g-gate (tanh), rest sigmoid.
    lane = jax.lax.broadcasted_iota(jnp.int32, (B_pad, 4 * H), 1)
    g_mask = (lane >= 2 * H) & (lane < 3 * H)

    def step(t, carry):
        h, c = carry                                          # f32 (B_pad, H)
        gates = xg_ref[t] + jnp.dot(h.astype(jnp.bfloat16), whh,
                                    preferred_element_type=jnp.float32)
        # Two full-tile EUP pushes + one lane select (no masked 32-lane slices).
        act = jnp.where(g_mask, jnp.tanh(gates), jax.nn.sigmoid(gates))
        i_g = act[:, 0:H]
        f_g = act[:, H:2 * H]
        g_g = act[:, 2 * H:3 * H]
        o_g = act[:, 3 * H:4 * H]
        c = f_g * c + i_g * g_g
        h = o_g * jnp.tanh(c)
        return h, c

    h0 = jnp.zeros((B_pad, H), jnp.float32)
    c0 = jnp.zeros((B_pad, H), jnp.float32)
    h, _ = jax.lax.fori_loop(0, T, step, (h0, c0), unroll=True)

    # Classifier head (BatchNorm folded into wlin/blin), lane-dense 128-wide N.
    logits = jnp.dot(h.astype(jnp.bfloat16), wlin_ref[...],
                     preferred_element_type=jnp.float32) + blin_ref[...]
    m = jnp.max(logits, axis=-1, keepdims=True)               # padded lanes = -1e30
    z = logits - m
    lse = jnp.log(jnp.sum(jnp.exp(z), axis=-1, keepdims=True))
    out_ref[...] = (z - lse).astype(out_ref.dtype)


def lstm_model_forward(tokens, params):
    """tokens: (B, T) int32 -> (B, nc) float32 log-probs."""
    B, T = tokens.shape
    lut = params["lut"]
    dsz = lut.shape[1]
    H = params["whh"].shape[0]
    nc = params["wlin"].shape[1]

    # Sublane-aligned batch (also raises effective MXU/VPU row occupancy).
    B_pad = max(8, ((B + 7) // 8) * 8)
    if B_pad != B:
        tokens_p = jnp.concatenate(
            [tokens, jnp.zeros((B_pad - B, T), tokens.dtype)], axis=0)
    else:
        tokens_p = tokens

    # Time-major gather -> (T, B_pad, dsz) bf16, flattened (tile-aligned since
    # B_pad % 8 == 0).
    x = jnp.take(lut, tokens_p.T, axis=0).astype(jnp.bfloat16)
    x = x.reshape(T * B_pad, dsz)

    # Fold eval-mode BatchNorm1d into the Linear head at trace time (same
    # 1/sqrt formulation as the reference).
    eps = jnp.float32(1e-5)
    scale = params["gamma"][0] / jnp.sqrt(params["running_var"][0] + eps)
    shift = params["beta"][0] - params["running_mean"][0] * scale
    wlin_f = scale[:, None] * params["wlin"]                    # (H, nc) f32
    blin_f = shift @ params["wlin"] + params["blin"][0]         # (nc,)  f32

    # Lane-dense head: zero-pad weight columns to 128, padded bias lanes get a
    # large negative value so LogSoftmax ignores them.
    wlin_p = jnp.zeros((H, NC_PAD), jnp.float32).at[:, :nc].set(wlin_f)
    blin_p = jnp.full((1, NC_PAD), -1e30, jnp.float32).at[0, :nc].set(blin_f)

    kernel = functools.partial(_lstm_head_kernel, T=T, B_pad=B_pad, H=H)

    out = pl.pallas_call(
        kernel,
        out_shape=jax.ShapeDtypeStruct((B_pad, NC_PAD), jnp.float32),
        # Gridless call: every operand is a whole-array block resident in VMEM.
        in_specs=[
            pl.BlockSpec(memory_space=pltpu.MemorySpace.VMEM),  # x  (T*B_pad, dsz)
            pl.BlockSpec(memory_space=pltpu.MemorySpace.VMEM),  # W_ih^T  bf16
            pl.BlockSpec(memory_space=pltpu.MemorySpace.VMEM),  # W_hh^T  bf16
            pl.BlockSpec(memory_space=pltpu.MemorySpace.VMEM),  # padded W_lin^T bf16
            pl.BlockSpec(memory_space=pltpu.MemorySpace.VMEM),  # padded b_lin f32
        ],
        out_specs=pl.BlockSpec(memory_space=pltpu.MemorySpace.VMEM),
        scratch_shapes=[pltpu.VMEM((T, B_pad, 4 * H), jnp.float32)],  # xg
        compiler_params=pltpu.CompilerParams(
            vmem_limit_bytes=32 * 1024 * 1024),  # safe on v5e/v6e/v7x
    )(x,
      params["wih"].astype(jnp.bfloat16),
      params["whh"].astype(jnp.bfloat16),
      wlin_p.astype(jnp.bfloat16),
      blin_p)

    return out[:B, :nc]


def reference_forward(tokens, params):
    """Pure-JAX f32 reference with identical (eval-mode) semantics."""
    emb = jnp.take(params["lut"], tokens, axis=0).astype(jnp.float32)  # (B,T,dsz)
    B = emb.shape[0]
    H = params["whh"].shape[0]

    def step(carry, x_t):
        h, c = carry
        gates = x_t @ params["wih"] + h @ params["whh"]
        i = jax.nn.sigmoid(gates[:, :H])
        f = jax.nn.sigmoid(gates[:, H:2 * H])
        g = jnp.tanh(gates[:, 2 * H:3 * H])
        o = jax.nn.sigmoid(gates[:, 3 * H:4 * H])
        c = f * c + i * g
        h = o * jnp.tanh(c)
        return (h, c), None

    init = (jnp.zeros((B, H), jnp.float32), jnp.zeros((B, H), jnp.float32))
    (h, _), _ = jax.lax.scan(step, init, jnp.transpose(emb, (1, 0, 2)))
    eps = 1e-5
    xn = ((h - params["running_mean"][0])
          * (params["gamma"][0] / jnp.sqrt(params["running_var"][0] + eps))
          + params["beta"][0])
    logits = xn @ params["wlin"] + params["blin"][0]
    return jax.nn.log_softmax(logits, axis=-1)


def init_params(key, vsz, dsz, hsz, nc, unif=0.25):
    kl, kih, khh, klw, klb = jax.random.split(key, 5)
    return {
        # nn.Embedding(vsz + 1, dsz) weights (as in embeddings.weights)
        "lut": jax.random.normal(kl, (vsz + 1, dsz), jnp.float32) * 0.1,
        # nn.LSTM(dsz, hsz, bias=False): weights ~ U(-unif, unif), stored transposed
        "wih": jax.random.uniform(kih, (dsz, 4 * hsz), jnp.float32, -unif, unif),
        "whh": jax.random.uniform(khh, (hsz, 4 * hsz), jnp.float32, -unif, unif),
        # nn.BatchNorm1d(hsz): affine params + running stats (fresh-init values)
        "gamma": jnp.ones((1, hsz), jnp.float32),
        "beta": jnp.zeros((1, hsz), jnp.float32),
        "running_mean": jnp.zeros((1, hsz), jnp.float32),
        "running_var": jnp.ones((1, hsz), jnp.float32),
        # nn.Linear(hsz, nc)
        "wlin": jax.random.uniform(klw, (hsz, nc), jnp.float32, -0.2, 0.2),
        "blin": jax.random.uniform(klb, (1, nc), jnp.float32, -0.2, 0.2),
    }


if __name__ == "__main__":
    B, T = 4, 8
    vsz, dsz, hsz, nc = 50, 32, 32, 3

    key = jax.random.PRNGKey(0)
    kp, kt = jax.random.split(key)
    params = init_params(kp, vsz, dsz, hsz, nc)
    tokens = jax.random.randint(kt, (B, T), 0, vsz + 1, dtype=jnp.int32)

    out = jax.jit(lstm_model_forward)(tokens, params)
    out = jax.block_until_ready(out)

    ref = reference_forward(tokens, params)
    assert out.shape == (B, nc)
    # Kernel runs MXU matmuls in bf16 (f32 accumulation) per the perf review;
    # reference is pure f32, so compare at a bf16-appropriate tolerance.
    assert jnp.allclose(out, ref, atol=5e-2, rtol=5e-2), (out, ref)

    print("KERNEL_OK")
</pallas_src>

<mosaic_0001>
module attributes {stable_mosaic.version = 11 : i64} {
  func.func @_lstm_head_kernel(%arg0: memref<64x32xbf16, #tpu.memory_space<vmem>>, %arg1: memref<32x128xbf16, #tpu.memory_space<vmem>>, %arg2: memref<32x128xbf16, #tpu.memory_space<vmem>>, %arg3: memref<32x128xbf16, #tpu.memory_space<vmem>>, %arg4: memref<1x128xf32, #tpu.memory_space<vmem>>, %arg5: memref<8x128xf32, #tpu.memory_space<vmem>>, %arg6: memref<8x8x128xf32, #tpu.memory_space<vmem>>) attributes {dimension_semantics = [], scalar_prefetch = 0 : i64, scratch_operands = 1 : i64, tpu.core_type = #tpu.core_type<tc>} {
    %c0 = arith.constant 0 : index
    %c0_0 = arith.constant 0 : index
    %0 = vector.load %arg0[%c0, %c0_0] : memref<64x32xbf16, #tpu.memory_space<vmem>>, vector<64x32xbf16>
    %c0_1 = arith.constant 0 : index
    %c0_2 = arith.constant 0 : index
    %1 = vector.load %arg1[%c0_1, %c0_2] : memref<32x128xbf16, #tpu.memory_space<vmem>>, vector<32x128xbf16>
    %cst = arith.constant dense<0.000000e+00> : vector<64x128xf32>
    %2 = tpu.matmul %0, %1, %cst {dimension_numbers = #tpu.dot_dimension_numbers<[1], [0], [0], [1], [0, 0, 1, 1], [], []>} : vector<64x32xbf16>, vector<32x128xbf16>, vector<64x128xf32> -> vector<64x128xf32>
    %3 = vector.shape_cast %2 : vector<64x128xf32> to vector<8x8x128xf32>
    %c0_3 = arith.constant 0 : index
    %c0_4 = arith.constant 0 : index
    %c0_5 = arith.constant 0 : index
    %4 = vector.load %arg6[%c0_3, %c0_4, %c0_5] : memref<8x8x128xf32, #tpu.memory_space<vmem>>, vector<8x8x128xf32>
    tpu.vector_store %arg6[%c0_3, %c0_4, %c0_5], %3 {strides = array<i32>} : memref<8x8x128xf32, #tpu.memory_space<vmem>>, vector<8x8x128xf32>,
    %c0_6 = arith.constant 0 : index
    %c0_7 = arith.constant 0 : index
    %5 = vector.load %arg2[%c0_6, %c0_7] : memref<32x128xbf16, #tpu.memory_space<vmem>>, vector<32x128xbf16>
    %6 = tpu.iota {dimensions = array<i32: 1>} : vector<8x128xi32>
    %c64_i32 = arith.constant 64 : i32
    %7 = vector.broadcast %c64_i32 : i32 to vector<8x128xi32>
    %8 = arith.cmpi sge, %6, %7 : vector<8x128xi32>
    %c96_i32 = arith.constant 96 : i32
    %9 = vector.broadcast %c96_i32 : i32 to vector<8x128xi32>
    %10 = arith.cmpi slt, %6, %9 : vector<8x128xi32>
    %11 = arith.andi %8, %10 : vector<8x128xi1>
    %cst_8 = arith.constant 0.000000e+00 : f32
    %12 = vector.broadcast %cst_8 : f32 to vector<8x32xf32>
    %cst_9 = arith.constant 0.000000e+00 : f32
    %13 = vector.broadcast %cst_9 : f32 to vector<8x32xf32>
    %c0_i32 = arith.constant 0 : i32
    %14 = arith.index_cast %c0_i32 : i32 to index
    %c0_10 = arith.constant 0 : index
    %c0_11 = arith.constant 0 : index
    %15 = vector.load %arg6[%14, %c0_10, %c0_11] : memref<8x8x128xf32, #tpu.memory_space<vmem>>, vector<1x8x128xf32>
    %16 = vector.shape_cast %15 : vector<1x8x128xf32> to vector<8x128xf32>
    %17 = arith.truncf %12 : vector<8x32xf32> to vector<8x32xbf16>
    %cst_12 = arith.constant dense<0.000000e+00> : vector<8x128xf32>
    %18 = tpu.matmul %17, %5, %cst_12 {dimension_numbers = #tpu.dot_dimension_numbers<[1], [0], [0], [1], [0, 0, 1, 1], [], []>} : vector<8x32xbf16>, vector<32x128xbf16>, vector<8x128xf32> -> vector<8x128xf32>
    %19 = arith.addf %16, %18 : vector<8x128xf32>
    %20 = math.tanh %19 : vector<8x128xf32>
    %21 = arith.negf %19 : vector<8x128xf32>
    %22 = math.exp %21 : vector<8x128xf32>
    %cst_13 = arith.constant 1.000000e+00 : f32
    %23 = vector.broadcast %cst_13 : f32 to vector<8x128xf32>
    %24 = arith.addf %23, %22 : vector<8x128xf32>
    %25 = arith.divf %23, %24 : vector<8x128xf32>
    %26 = arith.select %11, %20, %25 : vector<8x128xi1>, vector<8x128xf32>
    %27 = vector.extract_strided_slice %26 {offsets = [0, 0], sizes = [8, 32], strides = [1, 1]} : vector<8x128xf32> to vector<8x32xf32>
    %28 = vector.extract_strided_slice %26 {offsets = [0, 32], sizes = [8, 32], strides = [1, 1]} : vector<8x128xf32> to vector<8x32xf32>
    %29 = vector.extract_strided_slice %26 {offsets = [0, 64], sizes = [8, 32], strides = [1, 1]} : vector<8x128xf32> to vector<8x32xf32>
    %30 = vector.extract_strided_slice %26 {offsets = [0, 96], sizes = [8, 32], strides = [1, 1]} : vector<8x128xf32> to vector<8x32xf32>
    %31 = arith.mulf %28, %13 : vector<8x32xf32>
    %32 = arith.mulf %27, %29 : vector<8x32xf32>
    %33 = arith.addf %31, %32 : vector<8x32xf32>
    %34 = math.tanh %33 : vector<8x32xf32>
    %35 = arith.mulf %30, %34 : vector<8x32xf32>
    %c1_i32 = arith.constant 1 : i32
    %36 = arith.index_cast %c1_i32 : i32 to index
    %c0_14 = arith.constant 0 : index
    %c0_15 = arith.constant 0 : index
    %37 = vector.load %arg6[%36, %c0_14, %c0_15] : memref<8x8x128xf32, #tpu.memory_space<vmem>>, vector<1x8x128xf32>
    %38 = vector.shape_cast %37 : vector<1x8x128xf32> to vector<8x128xf32>
    %39 = arith.truncf %35 : vector<8x32xf32> to vector<8x32xbf16>
    %cst_16 = arith.constant dense<0.000000e+00> : vector<8x128xf32>
    %40 = tpu.matmul %39, %5, %cst_16 {dimension_numbers = #tpu.dot_dimension_numbers<[1], [0], [0], [1], [0, 0, 1, 1], [], []>} : vector<8x32xbf16>, vector<32x128xbf16>, vector<8x128xf32> -> vector<8x128xf32>
    %41 = arith.addf %38, %40 : vector<8x128xf32>
    %42 = math.tanh %41 : vector<8x128xf32>
    %43 = arith.negf %41 : vector<8x128xf32>
    %44 = math.exp %43 : vector<8x128xf32>
    %cst_17 = arith.constant 1.000000e+00 : f32
    %45 = vector.broadcast %cst_17 : f32 to vector<8x128xf32>
    %46 = arith.addf %45, %44 : vector<8x128xf32>
    %47 = arith.divf %45, %46 : vector<8x128xf32>
    %48 = arith.select %11, %42, %47 : vector<8x128xi1>, vector<8x128xf32>
    %49 = vector.extract_strided_slice %48 {offsets = [0, 0], sizes = [8, 32], strides = [1, 1]} : vector<8x128xf32> to vector<8x32xf32>
    %50 = vector.extract_strided_slice %48 {offsets = [0, 32], sizes = [8, 32], strides = [1, 1]} : vector<8x128xf32> to vector<8x32xf32>
    %51 = vector.extract_strided_slice %48 {offsets = [0, 64], sizes = [8, 32], strides = [1, 1]} : vector<8x128xf32> to vector<8x32xf32>
    %52 = vector.extract_strided_slice %48 {offsets = [0, 96], sizes = [8, 32], strides = [1, 1]} : vector<8x128xf32> to vector<8x32xf32>
    %53 = arith.mulf %50, %33 : vector<8x32xf32>
    %54 = arith.mulf %49, %51 : vector<8x32xf32>
    %55 = arith.addf %53, %54 : vector<8x32xf32>
    %56 = math.tanh %55 : vector<8x32xf32>
    %57 = arith.mulf %52, %56 : vector<8x32xf32>
    %c2_i32 = arith.constant 2 : i32
    %58 = arith.index_cast %c2_i32 : i32 to index
    %c0_18 = arith.constant 0 : index
    %c0_19 = arith.constant 0 : index
    %59 = vector.load %arg6[%58, %c0_18, %c0_19] : memref<8x8x128xf32, #tpu.memory_space<vmem>>, vector<1x8x128xf32>
    %60 = vector.shape_cast %59 : vector<1x8x128xf32> to vector<8x128xf32>
    %61 = arith.truncf %57 : vector<8x32xf32> to vector<8x32xbf16>
    %cst_20 = arith.constant dense<0.000000e+00> : vector<8x128xf32>
    %62 = tpu.matmul %61, %5, %cst_20 {dimension_numbers = #tpu.dot_dimension_numbers<[1], [0], [0], [1], [0, 0, 1, 1], [], []>} : vector<8x32xbf16>, vector<32x128xbf16>, vector<8x128xf32> -> vector<8x128xf32>
    %63 = arith.addf %60, %62 : vector<8x128xf32>
    %64 = math.tanh %63 : vector<8x128xf32>
    %65 = arith.negf %63 : vector<8x128xf32>
    %66 = math.exp %65 : vector<8x128xf32>
    %cst_21 = arith.constant 1.000000e+00 : f32
    %67 = vector.broadcast %cst_21 : f32 to vector<8x128xf32>
    %68 = arith.addf %67, %66 : vector<8x128xf32>
    %69 = arith.divf %67, %68 : vector<8x128xf32>
    %70 = arith.select %11, %64, %69 : vector<8x128xi1>, vector<8x128xf32>
    %71 = vector.extract_strided_slice %70 {offsets = [0, 0], sizes = [8, 32], strides = [1, 1]} : vector<8x128xf32> to vector<8x32xf32>
    %72 = vector.extract_strided_slice %70 {offsets = [0, 32], sizes = [8, 32], strides = [1, 1]} : vector<8x128xf32> to vector<8x32xf32>
    %73 = vector.extract_strided_slice %70 {offsets = [0, 64], sizes = [8, 32], strides = [1, 1]} : vector<8x128xf32> to vector<8x32xf32>
    %74 = vector.extract_strided_slice %70 {offsets = [0, 96], sizes = [8, 32], strides = [1, 1]} : vector<8x128xf32> to vector<8x32xf32>
    %75 = arith.mulf %72, %55 : vector<8x32xf32>
    %76 = arith.mulf %71, %73 : vector<8x32xf32>
    %77 = arith.addf %75, %76 : vector<8x32xf32>
    %78 = math.tanh %77 : vector<8x32xf32>
    %79 = arith.mulf %74, %78 : vector<8x32xf32>
    %c3_i32 = arith.constant 3 : i32
    %80 = arith.index_cast %c3_i32 : i32 to index
    %c0_22 = arith.constant 0 : index
    %c0_23 = arith.constant 0 : index
    %81 = vector.load %arg6[%80, %c0_22, %c0_23] : memref<8x8x128xf32, #tpu.memory_space<vmem>>, vector<1x8x128xf32>
    %82 = vector.shape_cast %81 : vector<1x8x128xf32> to vector<8x128xf32>
    %83 = arith.truncf %79 : vector<8x32xf32> to vector<8x32xbf16>
    %cst_24 = arith.constant dense<0.000000e+00> : vector<8x128xf32>
    %84 = tpu.matmul %83, %5, %cst_24 {dimension_numbers = #tpu.dot_dimension_numbers<[1], [0], [0], [1], [0, 0, 1, 1], [], []>} : vector<8x32xbf16>, vector<32x128xbf16>, vector<8x128xf32> -> vector<8x128xf32>
    %85 = arith.addf %82, %84 : vector<8x128xf32>
    %86 = math.tanh %85 : vector<8x128xf32>
    %87 = arith.negf %85 : vector<8x128xf32>
    %88 = math.exp %87 : vector<8x128xf32>
    %cst_25 = arith.constant 1.000000e+00 : f32
    %89 = vector.broadcast %cst_25 : f32 to vector<8x128xf32>
    %90 = arith.addf %89, %88 : vector<8x128xf32>
    %91 = arith.divf %89, %90 : vector<8x128xf32>
    %92 = arith.select %11, %86, %91 : vector<8x128xi1>, vector<8x128xf32>
    %93 = vector.extract_strided_slice %92 {offsets = [0, 0], sizes = [8, 32], strides = [1, 1]} : vector<8x128xf32> to vector<8x32xf32>
    %94 = vector.extract_strided_slice %92 {offsets = [0, 32], sizes = [8, 32], strides = [1, 1]} : vector<8x128xf32> to vector<8x32xf32>
    %95 = vector.extract_strided_slice %92 {offsets = [0, 64], sizes = [8, 32], strides = [1, 1]} : vector<8x128xf32> to vector<8x32xf32>
    %96 = vector.extract_strided_slice %92 {offsets = [0, 96], sizes = [8, 32], strides = [1, 1]} : vector<8x128xf32> to vector<8x32xf32>
    %97 = arith.mulf %94, %77 : vector<8x32xf32>
    %98 = arith.mulf %93, %95 : vector<8x32xf32>
    %99 = arith.addf %97, %98 : vector<8x32xf32>
    %100 = math.tanh %99 : vector<8x32xf32>
    %101 = arith.mulf %96, %100 : vector<8x32xf32>
    %c4_i32 = arith.constant 4 : i32
    %102 = arith.index_cast %c4_i32 : i32 to index
    %c0_26 = arith.constant 0 : index
    %c0_27 = arith.constant 0 : index
    %103 = vector.load %arg6[%102, %c0_26, %c0_27] : memref<8x8x128xf32, #tpu.memory_space<vmem>>, vector<1x8x128xf32>
    %104 = vector.shape_cast %103 : vector<1x8x128xf32> to vector<8x128xf32>
    %105 = arith.truncf %101 : vector<8x32xf32> to vector<8x32xbf16>
    %cst_28 = arith.constant dense<0.000000e+00> : vector<8x128xf32>
    %106 = tpu.matmul %105, %5, %cst_28 {dimension_numbers = #tpu.dot_dimension_numbers<[1], [0], [0], [1], [0, 0, 1, 1], [], []>} : vector<8x32xbf16>, vector<32x128xbf16>, vector<8x128xf32> -> vector<8x128xf32>
    %107 = arith.addf %104, %106 : vector<8x128xf32>
    %108 = math.tanh %107 : vector<8x128xf32>
    %109 = arith.negf %107 : vector<8x128xf32>
    %110 = math.exp %109 : vector<8x128xf32>
    %cst_29 = arith.constant 1.000000e+00 : f32
    %111 = vector.broadcast %cst_29 : f32 to vector<8x128xf32>
    %112 = arith.addf %111, %110 : vector<8x128xf32>
    %113 = arith.divf %111, %112 : vector<8x128xf32>
    %114 = arith.select %11, %108, %113 : vector<8x128xi1>, vector<8x128xf32>
    %115 = vector.extract_strided_slice %114 {offsets = [0, 0], sizes = [8, 32], strides = [1, 1]} : vector<8x128xf32> to vector<8x32xf32>
    %116 = vector.extract_strided_slice %114 {offsets = [0, 32], sizes = [8, 32], strides = [1, 1]} : vector<8x128xf32> to vector<8x32xf32>
    %117 = vector.extract_strided_slice %114 {offsets = [0, 64], sizes = [8, 32], strides = [1, 1]} : vector<8x128xf32> to vector<8x32xf32>
    %118 = vector.extract_strided_slice %114 {offsets = [0, 96], sizes = [8, 32], strides = [1, 1]} : vector<8x128xf32> to vector<8x32xf32>
    %119 = arith.mulf %116, %99 : vector<8x32xf32>
    %120 = arith.mulf %115, %117 : vector<8x32xf32>
    %121 = arith.addf %119, %120 : vector<8x32xf32>
    %122 = math.tanh %121 : vector<8x32xf32>
    %123 = arith.mulf %118, %122 : vector<8x32xf32>
    %c5_i32 = arith.constant 5 : i32
    %124 = arith.index_cast %c5_i32 : i32 to index
    %c0_30 = arith.constant 0 : index
    %c0_31 = arith.constant 0 : index
    %125 = vector.load %arg6[%124, %c0_30, %c0_31] : memref<8x8x128xf32, #tpu.memory_space<vmem>>, vector<1x8x128xf32>
    %126 = vector.shape_cast %125 : vector<1x8x128xf32> to vector<8x128xf32>
    %127 = arith.truncf %123 : vector<8x32xf32> to vector<8x32xbf16>
    %cst_32 = arith.constant dense<0.000000e+00> : vector<8x128xf32>
    %128 = tpu.matmul %127, %5, %cst_32 {dimension_numbers = #tpu.dot_dimension_numbers<[1], [0], [0], [1], [0, 0, 1, 1], [], []>} : vector<8x32xbf16>, vector<32x128xbf16>, vector<8x128xf32> -> vector<8x128xf32>
    %129 = arith.addf %126, %128 : vector<8x128xf32>
    %130 = math.tanh %129 : vector<8x128xf32>
    %131 = arith.negf %129 : vector<8x128xf32>
    %132 = math.exp %131 : vector<8x128xf32>
    %cst_33 = arith.constant 1.000000e+00 : f32
    %133 = vector.broadcast %cst_33 : f32 to vector<8x128xf32>
    %134 = arith.addf %133, %132 : vector<8x128xf32>
    %135 = arith.divf %133, %134 : vector<8x128xf32>
    %136 = arith.select %11, %130, %135 : vector<8x128xi1>, vector<8x128xf32>
    %137 = vector.extract_strided_slice %136 {offsets = [0, 0], sizes = [8, 32], strides = [1, 1]} : vector<8x128xf32> to vector<8x32xf32>
    %138 = vector.extract_strided_slice %136 {offsets = [0, 32], sizes = [8, 32], strides = [1, 1]} : vector<8x128xf32> to vector<8x32xf32>
    %139 = vector.extract_strided_slice %136 {offsets = [0, 64], sizes = [8, 32], strides = [1, 1]} : vector<8x128xf32> to vector<8x32xf32>
    %140 = vector.extract_strided_slice %136 {offsets = [0, 96], sizes = [8, 32], strides = [1, 1]} : vector<8x128xf32> to vector<8x32xf32>
    %141 = arith.mulf %138, %121 : vector<8x32xf32>
    %142 = arith.mulf %137, %139 : vector<8x32xf32>
    %143 = arith.addf %141, %142 : vector<8x32xf32>
    %144 = math.tanh %143 : vector<8x32xf32>
    %145 = arith.mulf %140, %144 : vector<8x32xf32>
    %c6_i32 = arith.constant 6 : i32
    %146 = arith.index_cast %c6_i32 : i32 to index
    %c0_34 = arith.constant 0 : index
    %c0_35 = arith.constant 0 : index
    %147 = vector.load %arg6[%146, %c0_34, %c0_35] : memref<8x8x128xf32, #tpu.memory_space<vmem>>, vector<1x8x128xf32>
    %148 = vector.shape_cast %147 : vector<1x8x128xf32> to vector<8x128xf32>
    %149 = arith.truncf %145 : vector<8x32xf32> to vector<8x32xbf16>
    %cst_36 = arith.constant dense<0.000000e+00> : vector<8x128xf32>
    %150 = tpu.matmul %149, %5, %cst_36 {dimension_numbers = #tpu.dot_dimension_numbers<[1], [0], [0], [1], [0, 0, 1, 1], [], []>} : vector<8x32xbf16>, vector<32x128xbf16>, vector<8x128xf32> -> vector<8x128xf32>
    %151 = arith.addf %148, %150 : vector<8x128xf32>
    %152 = math.tanh %151 : vector<8x128xf32>
    %153 = arith.negf %151 : vector<8x128xf32>
    %154 = math.exp %153 : vector<8x128xf32>
    %cst_37 = arith.constant 1.000000e+00 : f32
    %155 = vector.broadcast %cst_37 : f32 to vector<8x128xf32>
    %156 = arith.addf %155, %154 : vector<8x128xf32>
    %157 = arith.divf %155, %156 : vector<8x128xf32>
    %158 = arith.select %11, %152, %157 : vector<8x128xi1>, vector<8x128xf32>
    %159 = vector.extract_strided_slice %158 {offsets = [0, 0], sizes = [8, 32], strides = [1, 1]} : vector<8x128xf32> to vector<8x32xf32>
    %160 = vector.extract_strided_slice %158 {offsets = [0, 32], sizes = [8, 32], strides = [1, 1]} : vector<8x128xf32> to vector<8x32xf32>
    %161 = vector.extract_strided_slice %158 {offsets = [0, 64], sizes = [8, 32], strides = [1, 1]} : vector<8x128xf32> to vector<8x32xf32>
    %162 = vector.extract_strided_slice %158 {offsets = [0, 96], sizes = [8, 32], strides = [1, 1]} : vector<8x128xf32> to vector<8x32xf32>
    %163 = arith.mulf %160, %143 : vector<8x32xf32>
    %164 = arith.mulf %159, %161 : vector<8x32xf32>
    %165 = arith.addf %163, %164 : vector<8x32xf32>
    %166 = math.tanh %165 : vector<8x32xf32>
    %167 = arith.mulf %162, %166 : vector<8x32xf32>
    %c7_i32 = arith.constant 7 : i32
    %168 = arith.index_cast %c7_i32 : i32 to index
    %c0_38 = arith.constant 0 : index
    %c0_39 = arith.constant 0 : index
    %169 = vector.load %arg6[%168, %c0_38, %c0_39] : memref<8x8x128xf32, #tpu.memory_space<vmem>>, vector<1x8x128xf32>
    %170 = vector.shape_cast %169 : vector<1x8x128xf32> to vector<8x128xf32>
    %171 = arith.truncf %167 : vector<8x32xf32> to vector<8x32xbf16>
    %cst_40 = arith.constant dense<0.000000e+00> : vector<8x128xf32>
    %172 = tpu.matmul %171, %5, %cst_40 {dimension_numbers = #tpu.dot_dimension_numbers<[1], [0], [0], [1], [0, 0, 1, 1], [], []>} : vector<8x32xbf16>, vector<32x128xbf16>, vector<8x128xf32> -> vector<8x128xf32>
    %173 = arith.addf %170, %172 : vector<8x128xf32>
    %174 = math.tanh %173 : vector<8x128xf32>
    %175 = arith.negf %173 : vector<8x128xf32>
    %176 = math.exp %175 : vector<8x128xf32>
    %cst_41 = arith.constant 1.000000e+00 : f32
    %177 = vector.broadcast %cst_41 : f32 to vector<8x128xf32>
    %178 = arith.addf %177, %176 : vector<8x128xf32>
    %179 = arith.divf %177, %178 : vector<8x128xf32>
    %180 = arith.select %11, %174, %179 : vector<8x128xi1>, vector<8x128xf32>
    %181 = vector.extract_strided_slice %180 {offsets = [0, 0], sizes = [8, 32], strides = [1, 1]} : vector<8x128xf32> to vector<8x32xf32>
    %182 = vector.extract_strided_slice %180 {offsets = [0, 32], sizes = [8, 32], strides = [1, 1]} : vector<8x128xf32> to vector<8x32xf32>
    %183 = vector.extract_strided_slice %180 {offsets = [0, 64], sizes = [8, 32], strides = [1, 1]} : vector<8x128xf32> to vector<8x32xf32>
    %184 = vector.extract_strided_slice %180 {offsets = [0, 96], sizes = [8, 32], strides = [1, 1]} : vector<8x128xf32> to vector<8x32xf32>
    %185 = arith.mulf %182, %165 : vector<8x32xf32>
    %186 = arith.mulf %181, %183 : vector<8x32xf32>
    %187 = arith.addf %185, %186 : vector<8x32xf32>
    %188 = math.tanh %187 : vector<8x32xf32>
    %189 = arith.mulf %184, %188 : vector<8x32xf32>
    %c8_i32 = arith.constant 8 : i32
    %190 = arith.truncf %189 : vector<8x32xf32> to vector<8x32xbf16>
    %c0_42 = arith.constant 0 : index
    %c0_43 = arith.constant 0 : index
    %191 = vector.load %arg3[%c0_42, %c0_43] : memref<32x128xbf16, #tpu.memory_space<vmem>>, vector<32x128xbf16>
    %cst_44 = arith.constant dense<0.000000e+00> : vector<8x128xf32>
    %192 = tpu.matmul %190, %191, %cst_44 {dimension_numbers = #tpu.dot_dimension_numbers<[1], [0], [0], [1], [0, 0, 1, 1], [], []>} : vector<8x32xbf16>, vector<32x128xbf16>, vector<8x128xf32> -> vector<8x128xf32>
    %c0_45 = arith.constant 0 : index
    %c0_46 = arith.constant 0 : index
    %193 = vector.load %arg4[%c0_45, %c0_46] : memref<1x128xf32, #tpu.memory_space<vmem>>, vector<1x128xf32>
    %194 = vector.broadcast %193 : vector<1x128xf32> to vector<8x128xf32>
    %195 = arith.addf %192, %194 : vector<8x128xf32>
    %cst_47 = arith.constant dense<0xFF800000> : vector<8xf32>
    %196 = vector.multi_reduction <maximumf>, %195, %cst_47 [1] : vector<8x128xf32> to vector<8xf32>
    %197 = vector.shape_cast %196 : vector<8xf32> to vector<8x1xf32>
    %198 = vector.broadcast %197 : vector<8x1xf32> to vector<8x128xf32>
    %199 = arith.subf %195, %198 : vector<8x128xf32>
    %200 = math.exp %199 : vector<8x128xf32>
    %cst_48 = arith.constant dense<0.000000e+00> : vector<8xf32>
    %201 = vector.multi_reduction <add>, %200, %cst_48 [1] : vector<8x128xf32> to vector<8xf32>
    %202 = vector.shape_cast %201 : vector<8xf32> to vector<8x1xf32>
    %203 = math.log %202 : vector<8x1xf32>
    %204 = vector.broadcast %203 : vector<8x1xf32> to vector<8x128xf32>
    %205 = arith.subf %199, %204 : vector<8x128xf32>
    %c0_49 = arith.constant 0 : index
    %c0_50 = arith.constant 0 : index
    %206 = vector.load %arg5[%c0_49, %c0_50] : memref<8x128xf32, #tpu.memory_space<vmem>>, vector<8x128xf32>
    tpu.vector_store %arg5[%c0_49, %c0_50], %205 {strides = array<i32>} : memref<8x128xf32, #tpu.memory_space<vmem>>, vector<8x128xf32>,
    return
  }
}

</mosaic_0001>

<bundles_post_ra>
// kernel: lstm_model_forward.1
= control target key start
LH: loop header
LB: loop body
LE: loop exit
PB: predicated region body
PF: predicated region fallthrough
CT: control target
= control target key end

     0   :  { %vm65_vm0 = vcmask 261120   ;;  %v816_v5 = vmov 0   ;;  %v119_v13 = vlaneseq  ;;  %s969_s1 = inlined_call_operand.vmem [shape: bf16[32,128], index: 1, kind: input, shape index: {}]   ;;  %s970_s2 = inlined_call_operand.vmem [shape: bf16[32,128], index: 2, kind: input, shape index: {}]   ;;  %s971_s0 = inlined_call_operand.vmem [shape: bf16[64,32], index: 0, kind: input, shape index: {}]   ;;  %s972_s3 = inlined_call_operand.vmem [shape: bf16[32,128], index: 3, kind: input, shape index: {}]   ;;  %s973_s4 = inlined_call_operand.vmem [shape: f32[1,128], index: 4, kind: input, shape index: {}]   ;;  %s974_s5 = inlined_call_operand.vmem [shape: f32[8,128], index: 5, kind: output, shape index: {}]  }
   0x1   :  { %v739_v0 = vld [vmem:[%s969_s1 + $0x8] sm:$0xff]  ;;  %v738_v2 = vld [vmem:[%s969_s1] sm:$0xff]  ;;  %s817_s1 = smov 64  }
   0x2   :  { %v855_v1 = vld [vmem:[%s970_s2 + $0x8] sm:$0xff]  ;;  %84 = vmatpush.bf16.msra.mxu0 %v739_v0  ;;  %v864_v3 = vld [vmem:[%s970_s2] sm:$0xff]  ;;  %v120_v15 = vand.u32 127, %v119_v13  ;;  %s818_s2 = smov 32  }
   0x3   :  { %146 = vmatpush.bf16.msra.mxu1 %v855_v1  ;;  %207 = vmatpush.bf16.msra.mxu2 %v855_v1  ;;  %v734_v4 = vld [vmem:[%s971_s0] sm:$0xff]  ;;  %v735_v63 = vld [vmem:[%s971_s0 + $0x8] sm:$0xff] }
   0x4   :  { %268 = vmatpush.bf16.msra.mxu3 %v855_v1  ;;  %vm121_vm1 = vcmp.ge.s32.totalorder %v120_v15, 64  ;;  %vm122_vm2 = vcmp.lt.s32.totalorder %v120_v15, 96  ;;  %v742_v21 = vld [vmem:[%s972_s3] sm:$0xff] }
   0x5   :  { %vm883_vm4 = vmand %vm121_vm1, %vm122_vm2 }
   0x6   :  { %85 = vmatpush.bf16.msra.mxu0 %v738_v2 }
   0x7   :  { %147 = vmatpush.bf16.msra.mxu1 %v864_v3  ;;  %208 = vmatpush.bf16.msra.mxu2 %v864_v3 }
   0x8   :  { %269 = vmatpush.bf16.msra.mxu3 %v864_v3 }
   0x9   :  { %698 = vmatmul.msk.bf16.vlgmr.msra.gmra.mxu0 %vm65_vm0, %v734_v4 }
   0xa   :  { %148 = vmatmul.bf16.vlgmr.msra.gmra.mxu1 %v816_v5 }
   0xb   :  { %329 = vmatpush.bf16.msrb.mxu1 %v855_v1  ;;  %390 = vmatpush.bf16.msrb.mxu2 %v855_v1 }
   0xc   :  { %451 = vmatpush.bf16.msrb.mxu3 %v855_v1 }
   0xf   :  { %330 = vmatpush.bf16.msrb.mxu1 %v864_v3  ;;  %391 = vmatpush.bf16.msrb.mxu2 %v864_v3 }
  0x10   :  { %452 = vmatpush.bf16.msrb.mxu3 %v864_v3 }
  0x13   :  { %512 = vmatpush.bf16.msra.mxu1 %v855_v1 }
  0x17   :  { %513 = vmatpush.bf16.msra.mxu1 %v864_v3 }
  0x19   :  { %699 = vmatmul.msk.bf16.gmra.mxu0 %vm65_vm0, %v735_v63 }
  0x86   :  { %v87_v6 = vpop.f32.mrf.mxu0 }
  0x87   :  { %v149_v7 = vpop.f32.mrf.mxu1 }
  0x88   :  { %v153_v8 = vadd.f32 %v149_v7, %v87_v6 }
  0x8a   :  { %v710_v9 = vmul.f32 -1.442695, %v153_v8 }
  0x8c   :  { %748 = vpow2.f32 %v710_v9 }
  0x8e   :  { %v89_v38 = vpop.f32.mrf.mxu0 }
  0x8f   :  { %v151_v10 = vpop.f32.mrf.mxu1 }
  0x92   :  { %v749_v11 = vpop.eup %748 }
  0x93   :  { %v158_v12 = vadd.f32 1.0, %v749_v11 }
  0x95   :  { %750 = vrcp.f32 %v158_v12  ;;  %v170_v18 = vand.u32 2147483648, %v158_v12  ;;  %v168_v20 = vand.u32 2147483647, %v158_v12  ;;  %vm164_vm5 = vweird.f32 %v158_v12 }
  0x96   :  { %752 = vtanh.f32 %v153_v8  ;;  %v92_v4 = vpop.f32.mrf.mxu0 }
  0x97   :  { %v171_v23 = vor.u32 1.1754944e-38, %v170_v18  ;;  %vm169_vm7 = vcmp.eq.f32.partialorder %v168_v20, 8.507059e+37 }
  0x9b   :  { %v751_v14 = vpop.eup %750 }
  0x9c   :  { %v160_v16 = vmul.f32 %v751_v14, %v158_v12  ;;  %vm165_vm3 = vweird.f32 %v751_v14  ;;  %v753_v25 = vpop.eup %752 }
  0x9d   :  { %vm166_vm6 = vmor %vm164_vm5, %vm165_vm3 }
  0x9e   :  { %v161_v17 = vsub.f32 1.0, %v160_v16 }
  0xa0   :  { %v162_v19 = vmul.f32 %v751_v14, %v161_v17 }
  0xa2   :  { %v163_v22 = vadd.f32 %v751_v14, %v162_v19 }
  0xa4   :  { %v167_v24 = vsel %vm166_vm6, %v751_v14, %v163_v22 }
  0xa5   :  { %v172_v26 = vsel %vm169_vm7, %v171_v23, %v167_v24 }
  0xa6   :  { %v174_v27 = vsel %vm883_vm4, %v753_v25, %v172_v26 }
  0xa7   :  { %177 = vrot.lane.b32.xlu0 %v174_v27, %s817_s1  ;;  %v175_v30 = vmul.f32 0.0, %v174_v27 }
 0x119   :  { %v178_v28 = vpop.permute.xlu0 %177 }
 0x11a   :  { %v180_v29 = vmul.f32 %v178_v28, %v174_v27 }
 0x11c   :  { %182 = vrot.lane.b32.xlu0 %v180_v29, %s818_s2 }
 0x18e   :  { %v183_v31 = vpop.permute.xlu0 %182 }
 0x18f   :  { %v185_v32 = vadd.f32 %v183_v31, %v175_v30 }
 0x191   :  { %754 = vtanh.f32 %v185_v32 }
 0x197   :  { %v755_v33 = vpop.eup %754 }
 0x198   :  { %188 = vrot.lane.b32.xlu1 %v755_v33, %s817_s1 }
 0x20a   :  { %v189_v34 = vpop.permute.xlu1 %188 }
 0x20b   :  { %v191_v35 = vmul.f32 %v189_v34, %v174_v27  ;;  %v94_v34 = vpop.f32.mrf.mxu0 }
 0x20d   :  { %v194_v36 = vpack.c.bf16 %v191_v35, %v191_v35 }
 0x20f   :  { %196 = vrot.lane.b32.xlu1 %v194_v36, %s818_s2 }
 0x281   :  { %v197_v37 = vpop.permute.xlu1 %196 }
 0x282   :  { %711 = vmatmul.msk.bf16.vlgmr.msra.gmra.mxu2 %vm65_vm0, %v197_v37 }
 0x283   :  { %573 = vmatpush.bf16.msra.mxu2 %v855_v1 }
 0x287   :  { %574 = vmatpush.bf16.msra.mxu2 %v864_v3 }
 0x305   :  { %v210_v39 = vpop.f32.mrf.mxu2 }
 0x306   :  { %v214_v40 = vadd.f32 %v210_v39, %v89_v38 }
 0x308   :  { %v712_v41 = vmul.f32 -1.442695, %v214_v40 }
 0x30a   :  { %756 = vpow2.f32 %v712_v41 }
 0x30d   :  { %v212_v42 = vpop.f32.mrf.mxu2 }
 0x310   :  { %v757_v43 = vpop.eup %756 }
 0x311   :  { %v219_v44 = vadd.f32 1.0, %v757_v43 }
 0x313   :  { %758 = vrcp.f32 %v219_v44  ;;  %v231_v48 = vand.u32 2147483648, %v219_v44  ;;  %v229_v50 = vand.u32 2147483647, %v219_v44  ;;  %vm225_vm9 = vweird.f32 %v219_v44 }
 0x314   :  { %760 = vtanh.f32 %v214_v40 }
 0x315   :  { %v232_v52 = vor.u32 1.1754944e-38, %v231_v48  ;;  %vm230_vm11 = vcmp.eq.f32.partialorder %v229_v50, 8.507059e+37 }
 0x319   :  { %v759_v45 = vpop.eup %758 }
 0x31a   :  { %v221_v46 = vmul.f32 %v759_v45, %v219_v44  ;;  %vm226_vm8 = vweird.f32 %v759_v45  ;;  %v761_v54 = vpop.eup %760 }
 0x31b   :  { %vm227_vm10 = vmor %vm225_vm9, %vm226_vm8 }
 0x31c   :  { %v222_v47 = vsub.f32 1.0, %v221_v46 }
 0x31e   :  { %v223_v49 = vmul.f32 %v759_v45, %v222_v47 }
 0x320   :  { %v224_v51 = vadd.f32 %v759_v45, %v223_v49 }
 0x322   :  { %v228_v53 = vsel %vm227_vm10, %v759_v45, %v224_v51 }
 0x323   :  { %v233_v55 = vsel %vm230_vm11, %v232_v52, %v228_v53 }
 0x324   :  { %v235_v56 = vsel %vm883_vm4, %v761_v54, %v233_v55 }
 0x325   :  { %238 = vrot.lane.b32.xlu2 %v235_v56, %s817_s1  ;;  %v236_v59 = vmul.f32 %v235_v56, %v185_v32 }
 0x37f   :  { %v239_v57 = vpop.permute.xlu2 %238 }
 0x380   :  { %v241_v58 = vmul.f32 %v239_v57, %v235_v56 }
 0x382   :  { %243 = vrot.lane.b32.xlu2 %v241_v58, %s818_s2 }
 0x3dc   :  { %v244_v60 = vpop.permute.xlu2 %243 }
 0x3dd   :  { %v246_v61 = vadd.f32 %v244_v60, %v236_v59  ;;  %v736_v59 = vld [vmem:[%s971_s0 + $0x10] sm:$0xff] }
 0x3de   :  { %700 = vmatmul.msk.bf16.gmra.mxu0 %vm65_vm0, %v736_v59 }
 0x3df   :  { %762 = vtanh.f32 %v246_v61 }
 0x3e5   :  { %v763_v62 = vpop.eup %762 }
 0x3e6   :  { %249 = vrot.lane.b32.xlu0 %v763_v62, %s817_s1 }
 0x458   :  { %v250_v0 = vpop.permute.xlu0 %249 }
 0x459   :  { %v252_v1 = vmul.f32 %v250_v0, %v235_v56 }
 0x45b   :  { %v255_v2 = vpack.c.bf16 %v252_v1, %v252_v1  ;;  %v97_v0 = vpop.f32.mrf.mxu0 }
 0x45d   :  { %257 = vrot.lane.b32.xlu1 %v255_v2, %s818_s2 }
 0x4cf   :  { %v258_v3 = vpop.permute.xlu1 %257 }
 0x4d0   :  { %713 = vmatmul.msk.bf16.vlgmr.msra.gmra.mxu3 %vm65_vm0, %v258_v3 }
 0x553   :  { %v271_v5 = vpop.f32.mrf.mxu3 }
 0x554   :  { %v275_v6 = vadd.f32 %v271_v5, %v92_v4 }
 0x556   :  { %v714_v7 = vmul.f32 -1.442695, %v275_v6 }
 0x558   :  { %764 = vpow2.f32 %v714_v7 }
 0x55b   :  { %v273_v8 = vpop.f32.mrf.mxu3 }
 0x55e   :  { %v765_v9 = vpop.eup %764 }
 0x55f   :  { %v280_v10 = vadd.f32 1.0, %v765_v9 }
 0x561   :  { %766 = vrcp.f32 %v280_v10  ;;  %v292_v14 = vand.u32 2147483648, %v280_v10  ;;  %v290_v16 = vand.u32 2147483647, %v280_v10  ;;  %vm286_vm13 = vweird.f32 %v280_v10 }
 0x562   :  { %768 = vtanh.f32 %v275_v6 }
 0x563   :  { %v293_v18 = vor.u32 1.1754944e-38, %v292_v14  ;;  %vm291_vm15 = vcmp.eq.f32.partialorder %v290_v16, 8.507059e+37 }
 0x567   :  { %v767_v11 = vpop.eup %766 }
 0x568   :  { %v282_v12 = vmul.f32 %v767_v11, %v280_v10  ;;  %vm287_vm12 = vweird.f32 %v767_v11  ;;  %v769_v20 = vpop.eup %768 }
 0x569   :  { %vm288_vm14 = vmor %vm286_vm13, %vm287_vm12 }
 0x56a   :  { %v283_v13 = vsub.f32 1.0, %v282_v12 }
 0x56c   :  { %v284_v15 = vmul.f32 %v767_v11, %v283_v13 }
 0x56e   :  { %v285_v17 = vadd.f32 %v767_v11, %v284_v15 }
 0x570   :  { %v289_v19 = vsel %vm288_vm14, %v767_v11, %v285_v17 }
 0x571   :  { %v294_v22 = vsel %vm291_vm15, %v293_v18, %v289_v19 }
 0x572   :  { %v296_v23 = vsel %vm883_vm4, %v769_v20, %v294_v22 }
 0x573   :  { %299 = vrot.lane.b32.xlu2 %v296_v23, %s817_s1  ;;  %v297_v26 = vmul.f32 %v296_v23, %v246_v61 }
 0x5cd   :  { %v300_v24 = vpop.permute.xlu2 %299 }
 0x5ce   :  { %v302_v25 = vmul.f32 %v300_v24, %v296_v23 }
 0x5d0   :  { %304 = vrot.lane.b32.xlu0 %v302_v25, %s818_s2 }
 0x642   :  { %v305_v27 = vpop.permute.xlu0 %304 }
 0x643   :  { %v307_v28 = vadd.f32 %v305_v27, %v297_v26 }
 0x645   :  { %770 = vtanh.f32 %v307_v28 }
 0x64b   :  { %v771_v29 = vpop.eup %770 }
 0x64c   :  { %310 = vrot.lane.b32.xlu1 %v771_v29, %s817_s1 }
 0x6be   :  { %v311_v30 = vpop.permute.xlu1 %310 }
 0x6bf   :  { %v313_v31 = vmul.f32 %v311_v30, %v296_v23  ;;  %v99_v30 = vpop.f32.mrf.mxu0 }
 0x6c1   :  { %v316_v32 = vpack.c.bf16 %v313_v31, %v313_v31 }
 0x6c3   :  { %318 = vrot.lane.b32.xlu2 %v316_v32, %s818_s2 }
 0x71d   :  { %v319_v33 = vpop.permute.xlu2 %318 }
 0x71e   :  { %715 = vmatmul.msk.bf16.vlgmr.msrb.gmra.mxu1 %vm65_vm0, %v319_v33 }
 0x79b   :  { %v332_v35 = vpop.f32.mrf.mxu1 }
 0x79c   :  { %v336_v36 = vadd.f32 %v332_v35, %v94_v34 }
 0x79e   :  { %v716_v37 = vmul.f32 -1.442695, %v336_v36 }
 0x7a0   :  { %772 = vpow2.f32 %v716_v37 }
 0x7a3   :  { %v334_v38 = vpop.f32.mrf.mxu1 }
 0x7a6   :  { %v773_v39 = vpop.eup %772 }
 0x7a7   :  { %v341_v40 = vadd.f32 1.0, %v773_v39 }
 0x7a9   :  { %774 = vrcp.f32 %v341_v40  ;;  %v353_v44 = vand.u32 2147483648, %v341_v40  ;;  %v351_v46 = vand.u32 2147483647, %v341_v40  ;;  %vm347_vm2 = vweird.f32 %v341_v40 }
 0x7aa   :  { %776 = vtanh.f32 %v336_v36 }
 0x7ab   :  { %v354_v48 = vor.u32 1.1754944e-38, %v353_v44  ;;  %vm352_vm5 = vcmp.eq.f32.partialorder %v351_v46, 8.507059e+37 }
 0x7af   :  { %v775_v41 = vpop.eup %774 }
 0x7b0   :  { %v343_v42 = vmul.f32 %v775_v41, %v341_v40  ;;  %vm348_vm1 = vweird.f32 %v775_v41  ;;  %v777_v50 = vpop.eup %776 }
 0x7b1   :  { %vm349_vm3 = vmor %vm347_vm2, %vm348_vm1 }
 0x7b2   :  { %v344_v43 = vsub.f32 1.0, %v343_v42 }
 0x7b4   :  { %v345_v45 = vmul.f32 %v775_v41, %v344_v43 }
 0x7b6   :  { %v346_v47 = vadd.f32 %v775_v41, %v345_v45 }
 0x7b8   :  { %v350_v49 = vsel %vm349_vm3, %v775_v41, %v346_v47 }
 0x7b9   :  { %v355_v51 = vsel %vm352_vm5, %v354_v48, %v350_v49 }
 0x7ba   :  { %v357_v52 = vsel %vm883_vm4, %v777_v50, %v355_v51 }
 0x7bb   :  { %360 = vrot.lane.b32.xlu0 %v357_v52, %s817_s1  ;;  %v358_v55 = vmul.f32 %v357_v52, %v307_v28 }
 0x82d   :  { %v361_v53 = vpop.permute.xlu0 %360 }
 0x82e   :  { %v363_v54 = vmul.f32 %v361_v53, %v357_v52 }
 0x830   :  { %365 = vrot.lane.b32.xlu1 %v363_v54, %s818_s2 }
 0x8a2   :  { %v366_v56 = vpop.permute.xlu1 %365 }
 0x8a3   :  { %v368_v57 = vadd.f32 %v366_v56, %v358_v55  ;;  %v737_v55 = vld [vmem:[%s971_s0 + $0x18] sm:$0xff] }
 0x8a4   :  { %701 = vmatmul.msk.bf16.gmra.mxu0 %vm65_vm0, %v737_v55 }
 0x8a5   :  { %778 = vtanh.f32 %v368_v57 }
 0x8ab   :  { %v779_v58 = vpop.eup %778 }
 0x8ac   :  { %371 = vrot.lane.b32.xlu2 %v779_v58, %s817_s1 }
 0x906   :  { %v372_v60 = vpop.permute.xlu2 %371 }
 0x907   :  { %v374_v61 = vmul.f32 %v372_v60, %v357_v52 }
 0x909   :  { %v377_v62 = vpack.c.bf16 %v374_v61, %v374_v61 }
 0x90b   :  { %379 = vrot.lane.b32.xlu0 %v377_v62, %s818_s2 }
 0x921   :  { %v102_v60 = vpop.f32.mrf.mxu0 }
 0x97d   :  { %v380_v63 = vpop.permute.xlu0 %379 }
 0x97e   :  { %717 = vmatmul.msk.bf16.vlgmr.msrb.gmra.mxu2 %vm65_vm0, %v380_v63 }
 0xa01   :  { %v393_v1 = vpop.f32.mrf.mxu2 }
 0xa02   :  { %v397_v2 = vadd.f32 %v393_v1, %v97_v0 }
 0xa04   :  { %v718_v3 = vmul.f32 -1.442695, %v397_v2 }
 0xa06   :  { %780 = vpow2.f32 %v718_v3 }
 0xa09   :  { %v395_v4 = vpop.f32.mrf.mxu2 }
 0xa0c   :  { %v781_v5 = vpop.eup %780 }
 0xa0d   :  { %v402_v6 = vadd.f32 1.0, %v781_v5 }
 0xa0f   :  { %782 = vrcp.f32 %v402_v6  ;;  %v414_v10 = vand.u32 2147483648, %v402_v6  ;;  %v412_v12 = vand.u32 2147483647, %v402_v6  ;;  %vm408_vm7 = vweird.f32 %v402_v6 }
 0xa10   :  { %784 = vtanh.f32 %v397_v2 }
 0xa11   :  { %v415_v14 = vor.u32 1.1754944e-38, %v414_v10  ;;  %vm413_vm9 = vcmp.eq.f32.partialorder %v412_v12, 8.507059e+37 }
 0xa15   :  { %v783_v7 = vpop.eup %782 }
 0xa16   :  { %v404_v8 = vmul.f32 %v783_v7, %v402_v6  ;;  %vm409_vm6 = vweird.f32 %v783_v7  ;;  %v785_v16 = vpop.eup %784 }
 0xa17   :  { %vm410_vm8 = vmor %vm408_vm7, %vm409_vm6 }
 0xa18   :  { %v405_v9 = vsub.f32 1.0, %v404_v8 }
 0xa1a   :  { %v406_v11 = vmul.f32 %v783_v7, %v405_v9 }
 0xa1c   :  { %v407_v13 = vadd.f32 %v783_v7, %v406_v11 }
 0xa1e   :  { %v411_v15 = vsel %vm410_vm8, %v783_v7, %v407_v13 }
 0xa1f   :  { %v416_v17 = vsel %vm413_vm9, %v415_v14, %v411_v15 }
 0xa20   :  { %v418_v18 = vsel %vm883_vm4, %v785_v16, %v416_v17 }
 0xa21   :  { %421 = vrot.lane.b32.xlu1 %v418_v18, %s817_s1  ;;  %v419_v22 = vmul.f32 %v418_v18, %v368_v57 }
 0xa93   :  { %v422_v19 = vpop.permute.xlu1 %421 }
 0xa94   :  { %v424_v20 = vmul.f32 %v422_v19, %v418_v18 }
 0xa96   :  { %426 = vrot.lane.b32.xlu2 %v424_v20, %s818_s2 }
 0xaf0   :  { %v427_v23 = vpop.permute.xlu2 %426 }
 0xaf1   :  { %v429_v24 = vadd.f32 %v427_v23, %v419_v22 }
 0xaf3   :  { %786 = vtanh.f32 %v429_v24 }
 0xaf9   :  { %v787_v25 = vpop.eup %786 }
 0xafa   :  { %432 = vrot.lane.b32.xlu0 %v787_v25, %s817_s1 }
 0xb6c   :  { %v433_v26 = vpop.permute.xlu0 %432 }
 0xb6d   :  { %v435_v27 = vmul.f32 %v433_v26, %v418_v18  ;;  %v104_v26 = vpop.f32.mrf.mxu0 }
 0xb6f   :  { %v438_v28 = vpack.c.bf16 %v435_v27, %v435_v27 }
 0xb71   :  { %440 = vrot.lane.b32.xlu1 %v438_v28, %s818_s2 }
 0xbe3   :  { %v441_v29 = vpop.permute.xlu1 %440 }
 0xbe4   :  { %719 = vmatmul.msk.bf16.vlgmr.msrb.gmra.mxu3 %vm65_vm0, %v441_v29 }
 0xc67   :  { %v454_v31 = vpop.f32.mrf.mxu3 }
 0xc68   :  { %v458_v32 = vadd.f32 %v454_v31, %v99_v30 }
 0xc6a   :  { %v720_v33 = vmul.f32 -1.442695, %v458_v32 }
 0xc6c   :  { %788 = vpow2.f32 %v720_v33 }
 0xc6f   :  { %v456_v34 = vpop.f32.mrf.mxu3 }
 0xc72   :  { %v789_v35 = vpop.eup %788 }
 0xc73   :  { %v463_v36 = vadd.f32 1.0, %v789_v35 }
 0xc75   :  { %790 = vrcp.f32 %v463_v36  ;;  %v475_v40 = vand.u32 2147483648, %v463_v36  ;;  %v473_v42 = vand.u32 2147483647, %v463_v36  ;;  %vm469_vm11 = vweird.f32 %v463_v36 }
 0xc76   :  { %792 = vtanh.f32 %v458_v32 }
 0xc77   :  { %v476_v44 = vor.u32 1.1754944e-38, %v475_v40  ;;  %vm474_vm13 = vcmp.eq.f32.partialorder %v473_v42, 8.507059e+37 }
 0xc7b   :  { %v791_v37 = vpop.eup %790 }
 0xc7c   :  { %v465_v38 = vmul.f32 %v791_v37, %v463_v36  ;;  %vm470_vm10 = vweird.f32 %v791_v37  ;;  %v793_v46 = vpop.eup %792 }
 0xc7d   :  { %vm471_vm12 = vmor %vm469_vm11, %vm470_vm10 }
 0xc7e   :  { %v466_v39 = vsub.f32 1.0, %v465_v38 }
 0xc80   :  { %v467_v41 = vmul.f32 %v791_v37, %v466_v39 }
 0xc82   :  { %v468_v43 = vadd.f32 %v791_v37, %v467_v41 }
 0xc84   :  { %v472_v45 = vsel %vm471_vm12, %v791_v37, %v468_v43 }
 0xc85   :  { %v477_v47 = vsel %vm474_vm13, %v476_v44, %v472_v45 }
 0xc86   :  { %v479_v48 = vsel %vm883_vm4, %v793_v46, %v477_v47 }
 0xc87   :  { %482 = vrot.lane.b32.xlu2 %v479_v48, %s817_s1  ;;  %v480_v51 = vmul.f32 %v479_v48, %v429_v24 }
 0xce1   :  { %v483_v49 = vpop.permute.xlu2 %482 }
 0xce2   :  { %v485_v50 = vmul.f32 %v483_v49, %v479_v48 }
 0xce4   :  { %487 = vrot.lane.b32.xlu0 %v485_v50, %s818_s2 }
 0xd56   :  { %v488_v52 = vpop.permute.xlu0 %487 }
 0xd57   :  { %v490_v53 = vadd.f32 %v488_v52, %v480_v51  ;;  %v743_v51 = vld [vmem:[%s972_s3 + $0x8] sm:$0xff] }
 0xd58   :  { %652 = vmatpush.bf16.msra.mxu3 %v743_v51 }
 0xd59   :  { %794 = vtanh.f32 %v490_v53 }
 0xd5c   :  { %653 = vmatpush.bf16.msra.mxu3 %v742_v21 }
 0xd5f   :  { %v795_v54 = vpop.eup %794 }
 0xd60   :  { %493 = vrot.lane.b32.xlu1 %v795_v54, %s817_s1 }
 0xdd2   :  { %v494_v56 = vpop.permute.xlu1 %493 }
 0xdd3   :  { %v496_v57 = vmul.f32 %v494_v56, %v479_v48  ;;  %v747_v56 = vld [vmem:[%s973_s4] ss:$0 sm:$0xff] }
 0xdd5   :  { %v499_v58 = vpack.c.bf16 %v496_v57, %v496_v57 }
 0xdd7   :  { %501 = vrot.lane.b32.xlu2 %v499_v58, %s818_s2 }
 0xe31   :  { %v502_v59 = vpop.permute.xlu2 %501 }
 0xe32   :  { %721 = vmatmul.msk.bf16.vlgmr.msra.gmra.mxu1 %vm65_vm0, %v502_v59 }
 0xeaf   :  { %v515_v61 = vpop.f32.mrf.mxu1 }
 0xeb0   :  { %v519_v62 = vadd.f32 %v515_v61, %v102_v60 }
 0xeb2   :  { %v722_v63 = vmul.f32 -1.442695, %v519_v62 }
 0xeb4   :  { %796 = vpow2.f32 %v722_v63 }
 0xeb7   :  { %v517_v0 = vpop.f32.mrf.mxu1 }
 0xeba   :  { %v797_v1 = vpop.eup %796 }
 0xebb   :  { %v524_v2 = vadd.f32 1.0, %v797_v1 }
 0xebd   :  { %798 = vrcp.f32 %v524_v2  ;;  %v536_v6 = vand.u32 2147483648, %v524_v2  ;;  %v534_v8 = vand.u32 2147483647, %v524_v2  ;;  %vm530_vm15 = vweird.f32 %v524_v2 }
 0xebe   :  { %800 = vtanh.f32 %v519_v62 }
 0xebf   :  { %v537_v10 = vor.u32 1.1754944e-38, %v536_v6  ;;  %vm535_vm2 = vcmp.eq.f32.partialorder %v534_v8, 8.507059e+37 }
 0xec3   :  { %v799_v3 = vpop.eup %798 }
 0xec4   :  { %v526_v4 = vmul.f32 %v799_v3, %v524_v2  ;;  %vm531_vm14 = vweird.f32 %v799_v3  ;;  %v801_v12 = vpop.eup %800 }
 0xec5   :  { %vm532_vm1 = vmor %vm530_vm15, %vm531_vm14 }
 0xec6   :  { %v527_v5 = vsub.f32 1.0, %v526_v4 }
 0xec8   :  { %v528_v7 = vmul.f32 %v799_v3, %v527_v5 }
 0xeca   :  { %v529_v9 = vadd.f32 %v799_v3, %v528_v7 }
 0xecc   :  { %v533_v11 = vsel %vm532_vm1, %v799_v3, %v529_v9 }
 0xecd   :  { %v538_v13 = vsel %vm535_vm2, %v537_v10, %v533_v11 }
 0xece   :  { %v540_v14 = vsel %vm883_vm4, %v801_v12, %v538_v13 }
 0xecf   :  { %543 = vrot.lane.b32.xlu0 %v540_v14, %s817_s1  ;;  %v541_v17 = vmul.f32 %v540_v14, %v490_v53 }
 0xf41   :  { %v544_v15 = vpop.permute.xlu0 %543 }
 0xf42   :  { %v546_v16 = vmul.f32 %v544_v15, %v540_v14 }
 0xf44   :  { %548 = vrot.lane.b32.xlu1 %v546_v16, %s818_s2 }
 0xfb6   :  { %v549_v18 = vpop.permute.xlu1 %548 }
 0xfb7   :  { %v551_v19 = vadd.f32 %v549_v18, %v541_v17 }
 0xfb9   :  { %802 = vtanh.f32 %v551_v19 }
 0xfbf   :  { %v803_v20 = vpop.eup %802 }
 0xfc0   :  { %554 = vrot.lane.b32.xlu2 %v803_v20, %s817_s1 }
0x101a   :  { %v555_v22 = vpop.permute.xlu2 %554 }
0x101b   :  { %v557_v23 = vmul.f32 %v555_v22, %v540_v14 }
0x101d   :  { %v560_v24 = vpack.c.bf16 %v557_v23, %v557_v23 }
0x101f   :  { %562 = vrot.lane.b32.xlu0 %v560_v24, %s818_s2 }
0x1091   :  { %v563_v25 = vpop.permute.xlu0 %562 }
0x1092   :  { %723 = vmatmul.msk.bf16.vlgmr.msra.gmra.mxu2 %vm65_vm0, %v563_v25 }
0x1115   :  { %v576_v27 = vpop.f32.mrf.mxu2 }
0x1116   :  { %v580_v28 = vadd.f32 %v576_v27, %v104_v26 }
0x1118   :  { %v724_v29 = vmul.f32 -1.442695, %v580_v28 }
0x111a   :  { %804 = vpow2.f32 %v724_v29 }
0x111d   :  { %v578_v30 = vpop.f32.mrf.mxu2 }
0x1120   :  { %v805_v31 = vpop.eup %804 }
0x1121   :  { %v585_v32 = vadd.f32 1.0, %v805_v31 }
0x1123   :  { %806 = vrcp.f32 %v585_v32  ;;  %v597_v36 = vand.u32 2147483648, %v585_v32  ;;  %v595_v38 = vand.u32 2147483647, %v585_v32  ;;  %vm591_vm5 = vweird.f32 %v585_v32 }
0x1124   :  { %808 = vtanh.f32 %v580_v28 }
0x1125   :  { %v598_v40 = vor.u32 1.1754944e-38, %v597_v36  ;;  %vm596_vm7 = vcmp.eq.f32.partialorder %v595_v38, 8.507059e+37 }
0x1129   :  { %v807_v33 = vpop.eup %806 }
0x112a   :  { %v587_v34 = vmul.f32 %v807_v33, %v585_v32  ;;  %vm592_vm3 = vweird.f32 %v807_v33  ;;  %v809_v42 = vpop.eup %808 }
0x112b   :  { %vm593_vm6 = vmor %vm591_vm5, %vm592_vm3 }
0x112c   :  { %v588_v35 = vsub.f32 1.0, %v587_v34 }
0x112e   :  { %v589_v37 = vmul.f32 %v807_v33, %v588_v35 }
0x1130   :  { %v590_v39 = vadd.f32 %v807_v33, %v589_v37 }
0x1132   :  { %v594_v41 = vsel %vm593_vm6, %v807_v33, %v590_v39 }
0x1133   :  { %v599_v43 = vsel %vm596_vm7, %v598_v40, %v594_v41 }
0x1134   :  { %v601_v44 = vsel %vm883_vm4, %v809_v42, %v599_v43 }
0x1135   :  { %604 = vrot.lane.b32.xlu1 %v601_v44, %s817_s1  ;;  %v602_v47 = vmul.f32 %v601_v44, %v551_v19 }
0x11a7   :  { %v605_v45 = vpop.permute.xlu1 %604 }
0x11a8   :  { %v607_v46 = vmul.f32 %v605_v45, %v601_v44 }
0x11aa   :  { %609 = vrot.lane.b32.xlu2 %v607_v46, %s818_s2 }
0x1204   :  { %v610_v48 = vpop.permute.xlu2 %609 }
0x1205   :  { %v612_v49 = vadd.f32 %v610_v48, %v602_v47 }
0x1207   :  { %810 = vtanh.f32 %v612_v49 }
0x120d   :  { %v811_v50 = vpop.eup %810 }
0x120e   :  { %615 = vrot.lane.b32.xlu0 %v811_v50, %s817_s1 }
0x1280   :  { %v616_v52 = vpop.permute.xlu0 %615 }
0x1281   :  { %v618_v53 = vmul.f32 %v616_v52, %v601_v44 }
0x1283   :  { %v619_v54 = vpack.c.bf16 %v618_v53, %v618_v53 }
0x1285   :  { %629 = vrot.lane.b32.xlu1 %v619_v54, %s818_s2 }
0x12f7   :  { %v630_v55 = vpop.permute.xlu1 %629 }
0x12f8   :  { %733 = vmatmul.msk.bf16.vlgmr.msra.gmra.mxu3 %vm65_vm0, %v630_v55 }
0x137b   :  { %v655_v57 = vpop.f32.mrf.mxu3 }
0x137c   :  { %v656_v58 = vadd.f32 %v747_v56, %v655_v57 }
0x137e   :  { %659 = vmax.xlane.f32.xlu2 %v656_v58 }
0x1383   :  { %v657_v59 = vpop.f32.mrf.mxu3 }
0x13f1   :  { %v660_v60 = vpop.xlane.xlu2 %659 }
0x13f2   :  { %v661_v61 = vsub.f32 %v656_v58, %v660_v60 }
0x13f4   :  { %v662_v62 = vmul.f32 1.442695, %v661_v61 }
0x13f6   :  { %812 = vpow2.f32 %v662_v62 }
0x13fc   :  { %v813_v63 = vpop.eup %812 }
0x13fd   :  { %664 = vadd.xlane.f32.xlu0 %v813_v63 }
0x1470   :  { %v665_v0 = vpop.xlane.xlu0 %664 }
0x1471   :  { %814 = vlog2.f32 %v665_v0 }
0x1477   :  { %v815_v1 = vpop.eup %814 }
0x1478   :  { %v667_v2 = vmul.f32 0.6931472, %v815_v1 }
0x147a   :  { %v668_v3 = vsub.f32 %v661_v61, %v667_v2 }
0x147c   :  { %669 = vst [vmem:[%s974_s5] sm:$0xff] %v668_v3 }

</bundles_post_ra>
